<compile_context>
chip_gen: v7x
topology: tpu7x:2x2x1
jax: 0.10.0
libtpu: 0.0.40
codegen_flags: <defaults>
</compile_context>

<pallas_src>
import functools

import jax
import jax.numpy as jnp
from jax.experimental import pallas as pl
from jax.experimental.pallas import tpu as pltpu

_LANE = 128      # channel dims padded to multiples of this
_SUBLANE = 8     # graph dim padded to multiples of this


def _round_up(x, m):
    return ((x + m - 1) // m) * m


def _pad_to(x, shape):
    pads = [(0, t - s) for s, t in zip(x.shape, shape)]
    return jnp.pad(x, pads)


def _vmem_limit_bytes():
    """Generation-aware scoped-VMEM cap (v7x has 64 MiB phys, v5e/v6e 128)."""
    phys = 128 * 1024 * 1024
    try:
        info = pltpu.get_tpu_info()
        phys = int(getattr(info, "vmem_capacity_bytes", phys)) or phys
    except Exception:
        pass
    return min(64 * 1024 * 1024, (phys * 3) // 4)


def _select_config(n_pad, c_max, vmem_limit):
    """Pick (tm, tk, xw_resident): biggest power-of-two tile dividing n_pad
    whose double-buffered working set fits 80% of the scoped-VMEM cap."""
    cap = int(vmem_limit * 0.8)
    for t in (2048, 1024, 512, 256, 128):
        if t > n_pad or n_pad % t:
            continue
        tm = tk = t
        base = (2 * tm * tk * 2            # A_hat tiles (2 bufs, bf16)
                + 2 * tm * c_max * 2       # output tiles (2 bufs, bf16)
                + tm * c_max * 4           # f32 accumulator scratch
                + 4 * c_max * c_max * 4)   # resident W_next / bias / slack
        if base + 2 * n_pad * c_max * 2 <= cap:   # whole XW resident in VMEM
            return tm, tk, True
        if base + 2 * tk * c_max * 2 <= cap:      # streamed K-slab fallback
            return tm, tk, False
    return 128, 128, False


# ---------------------------------------------------------------------------
# Kernel 1 (layer 0 only): feature transform  XW = X @ W  -> bf16
# ---------------------------------------------------------------------------
def _xw_kernel(x_ref, w_ref, o_ref):
    o_ref[...] = jnp.dot(
        x_ref[...], w_ref[...], preferred_element_type=jnp.float32
    ).astype(o_ref.dtype)


def feature_transform(x, w, *, tm, vmem_limit):
    n_pad, c_in = x.shape
    c_out = w.shape[1]
    return pl.pallas_call(
        _xw_kernel,
        out_shape=jax.ShapeDtypeStruct((n_pad, c_out), jnp.bfloat16),
        grid_spec=pltpu.PrefetchScalarGridSpec(
            num_scalar_prefetch=0,
            grid=(n_pad // tm,),
            in_specs=[
                pl.BlockSpec((tm, c_in), lambda i: (i, 0)),
                pl.BlockSpec((c_in, c_out), lambda i: (0, 0)),
            ],
            out_specs=pl.BlockSpec((tm, c_out), lambda i: (i, 0)),
        ),
        compiler_params=pltpu.CompilerParams(
            dimension_semantics=("parallel",),
            vmem_limit_bytes=vmem_limit),
    )(x, w)


# ---------------------------------------------------------------------------
# Kernel 2: aggregation (tiled row x K grid, f32 VMEM accumulator).
#   fuse_next=True  : out = (relu(A_hat @ XW + b)) @ W_next        (bf16)
#   fuse_next=False : out =  A_hat @ XW + b  [+ relu if requested]  (bf16)
# XW either fully VMEM-resident (constant block, sliced per K-step) or a
# streamed (tk, C) K-slab.
# ---------------------------------------------------------------------------
def _aggregate_kernel(a_ref, xw_ref, b_ref, *rest,
                      apply_relu, fuse_next, xw_resident, tk):
    if fuse_next:
        wn_ref, o_ref, acc_ref = rest
    else:
        o_ref, acc_ref = rest

    k = pl.program_id(1)

    @pl.when(k == 0)
    def _():
        acc_ref[...] = jnp.zeros_like(acc_ref)

    if xw_resident:
        start = pl.multiple_of(k * tk, tk)
        xw_tile = xw_ref[pl.ds(start, tk), :]
    else:
        xw_tile = xw_ref[...]

    acc_ref[...] += jnp.dot(a_ref[...], xw_tile,
                            preferred_element_type=jnp.float32)

    @pl.when(k == pl.num_programs(1) - 1)
    def _():
        # Bias (+ ReLU) (+ next layer's X @ W) fused into final-k writeback.
        y = acc_ref[...] + b_ref[...]
        if apply_relu:
            y = jnp.maximum(y, 0.0)
        if fuse_next:
            o_ref[...] = jnp.dot(
                y, wn_ref[...], preferred_element_type=jnp.float32
            ).astype(o_ref.dtype)
        else:
            o_ref[...] = y.astype(o_ref.dtype)


def gcn_aggregate(a_hat_bf16, xw_bf16, b, w_next, *, tm, tk, xw_resident,
                  apply_relu, vmem_limit):
    n_pad = a_hat_bf16.shape[0]
    c = xw_bf16.shape[1]
    fuse_next = w_next is not None
    c_out = w_next.shape[1] if fuse_next else c

    if xw_resident:
        xw_spec = pl.BlockSpec((n_pad, c), lambda i, k: (0, 0))   # DMA'd once
    else:
        xw_spec = pl.BlockSpec((tk, c), lambda i, k: (k, 0))      # K-slab

    in_specs = [
        pl.BlockSpec((tm, tk), lambda i, k: (i, k)),   # A_hat tile (bf16)
        xw_spec,                                       # XW
        pl.BlockSpec((1, c), lambda i, k: (0, 0)),     # bias
    ]
    args = [a_hat_bf16, xw_bf16, b]
    if fuse_next:
        in_specs.append(pl.BlockSpec((c, c_out), lambda i, k: (0, 0)))
        args.append(w_next)

    kernel = functools.partial(_aggregate_kernel, apply_relu=apply_relu,
                               fuse_next=fuse_next, xw_resident=xw_resident,
                               tk=tk)
    return pl.pallas_call(
        kernel,
        out_shape=jax.ShapeDtypeStruct((n_pad, c_out), jnp.bfloat16),
        grid_spec=pltpu.PrefetchScalarGridSpec(
            num_scalar_prefetch=0,
            grid=(n_pad // tm, n_pad // tk),
            in_specs=in_specs,
            out_specs=pl.BlockSpec((tm, c_out), lambda i, k: (i, 0)),
            scratch_shapes=[pltpu.VMEM((tm, c), jnp.float32)],
        ),
        compiler_params=pltpu.CompilerParams(
            dimension_semantics=("parallel", "arbitrary"),
            vmem_limit_bytes=vmem_limit),
    )(*args)


# ---------------------------------------------------------------------------
# Kernel 3: fused global_mean_pool + Linear (streaming reduction over nodes)
# ---------------------------------------------------------------------------
def _pool_fc_kernel(p_ref, h_ref, wfc_ref, bfc_ref, o_ref, acc_ref):
    k = pl.program_id(0)

    @pl.when(k == 0)
    def _():
        acc_ref[...] = jnp.zeros_like(acc_ref)

    acc_ref[...] += jnp.dot(p_ref[...], h_ref[...],
                            preferred_element_type=jnp.float32)

    @pl.when(k == pl.num_programs(0) - 1)
    def _():
        out = jnp.dot(acc_ref[...], wfc_ref[...],
                      preferred_element_type=jnp.float32) + bfc_ref[...]
        o_ref[...] = out.astype(o_ref.dtype)


def pool_and_fc(pool_bf16, h_bf16, w_fc, b_fc, *, tm, vmem_limit):
    g_pad, n_pad = pool_bf16.shape
    c = h_bf16.shape[1]
    o = w_fc.shape[1]
    return pl.pallas_call(
        _pool_fc_kernel,
        out_shape=jax.ShapeDtypeStruct((g_pad, o), jnp.float32),
        grid_spec=pltpu.PrefetchScalarGridSpec(
            num_scalar_prefetch=0,
            grid=(n_pad // tm,),
            in_specs=[
                pl.BlockSpec((g_pad, tm), lambda k: (0, k)),   # pooling slab (bf16)
                pl.BlockSpec((tm, c), lambda k: (k, 0)),       # H row tile (bf16)
                pl.BlockSpec((c, o), lambda k: (0, 0)),        # fc weight
                pl.BlockSpec((1, o), lambda k: (0, 0)),        # fc bias
            ],
            out_specs=pl.BlockSpec((g_pad, o), lambda k: (0, 0)),
            scratch_shapes=[pltpu.VMEM((g_pad, c), jnp.float32)],
        ),
        compiler_params=pltpu.CompilerParams(
            dimension_semantics=("arbitrary",),
            vmem_limit_bytes=vmem_limit),
    )(pool_bf16, h_bf16, w_fc, b_fc)


# ---------------------------------------------------------------------------
# Glue: normalized adjacency (GCNConv semantics) and mean-pool matrix.
# Built ONCE per graph (outside the forward hot path), stored bf16.
# ---------------------------------------------------------------------------
def build_normalized_adjacency(edge_index, num_nodes):
    """A_hat = D^{-1/2} (A + I) D^{-1/2}, messages flow src -> dst."""
    src, dst = edge_index[0], edge_index[1]
    a = jnp.zeros((num_nodes, num_nodes), jnp.float32)
    a = a.at[dst, src].add(1.0)                    # A[i, j] = edge j -> i
    a = a + jnp.eye(num_nodes, dtype=jnp.float32)  # self loops
    deg = a.sum(axis=1)
    d_inv_sqrt = jnp.where(deg > 0, 1.0 / jnp.sqrt(deg), 0.0)
    return d_inv_sqrt[:, None] * a * d_inv_sqrt[None, :]


def build_pool_matrix(batch, num_graphs):
    onehot = (batch[None, :] == jnp.arange(num_graphs)[:, None]).astype(jnp.float32)
    counts = jnp.clip(onehot.sum(axis=1, keepdims=True), 1.0, None)
    return onehot / counts


def precompute_graph(edge_index, batch, num_nodes, num_graphs):
    n_pad = _round_up(num_nodes, _LANE)
    g_pad = _round_up(num_graphs, _SUBLANE)
    a_hat = build_normalized_adjacency(edge_index, num_nodes)
    # TODO(synk): per-generation A_hat narrowing (fp8-e4m3 on v7x, int8+scale
    # on v5e/v6e) would halve the dominant HBM stream again; kept bf16 here
    # for cross-generation correctness.
    a_hat = _pad_to(a_hat, (n_pad, n_pad)).astype(jnp.bfloat16)
    pool = _pad_to(build_pool_matrix(batch, num_graphs), (g_pad, n_pad))
    return a_hat, pool.astype(jnp.bfloat16)


# ---------------------------------------------------------------------------
# Parameters (channel dims zero-padded to lane multiples of 128)
# ---------------------------------------------------------------------------
def init_params(key, in_channels, hidden_channels, num_layers, out_channels):
    c_in_pad = _round_up(in_channels, _LANE)
    c_hid_pad = _round_up(hidden_channels, _LANE)
    c_out_pad = _round_up(out_channels, _LANE)
    layers = [in_channels] + [hidden_channels] * num_layers
    layers_pad = [c_in_pad] + [c_hid_pad] * num_layers
    params = {"conv_w": [], "conv_b": []}
    for i in range(num_layers):
        key, kw = jax.random.split(key)
        fan_in, fan_out = layers[i], layers[i + 1]
        scale = jnp.sqrt(6.0 / (fan_in + fan_out))  # glorot-uniform-ish
        w = jax.random.uniform(kw, (fan_in, fan_out), jnp.float32, -scale, scale)
        params["conv_w"].append(_pad_to(w, (layers_pad[i], layers_pad[i + 1])))
        params["conv_b"].append(jnp.zeros((1, layers_pad[i + 1]), jnp.float32))
    key, kfc = jax.random.split(key)
    scale = 1.0 / jnp.sqrt(hidden_channels)
    w_fc = jax.random.uniform(kfc, (hidden_channels, out_channels), jnp.float32,
                              -scale, scale)
    params["fc_w"] = _pad_to(w_fc, (c_hid_pad, c_out_pad))
    params["fc_b"] = jnp.zeros((1, c_out_pad), jnp.float32)
    return params


# ---------------------------------------------------------------------------
# SimpleGCN forward
# ---------------------------------------------------------------------------
def simple_gcn_forward(params, x, a_hat_bf16, pool_bf16, num_graphs,
                       out_channels, drop_prob=0.0):
    # TODO(synk): dropout with drop_prob > 0 not implemented; the module's
    # default drop_prob=0.0 makes F.dropout an identity here.
    n_pad = a_hat_bf16.shape[0]
    conv_w, conv_b = params["conv_w"], params["conv_b"]
    num_layers = len(conv_w)

    c_max = max([conv_w[0].shape[0]] + [w.shape[1] for w in conv_w]
                + [params["fc_w"].shape[1]])
    vmem_limit = _vmem_limit_bytes()
    tm, tk, xw_resident = _select_config(n_pad, c_max, vmem_limit)

    c_in_pad = conv_w[0].shape[0]
    h = _pad_to(x, (n_pad, c_in_pad))          # zero-pad nodes + input channels

    # Layer 0 feature transform (bf16 XW); all later X@W are fused epilogues.
    xw = feature_transform(h, conv_w[0], tm=tm, vmem_limit=vmem_limit)

    # Intermediate layers: aggregation + ReLU with the NEXT layer's X@W fused
    # into the final-k epilogue -> one pallas_call per layer.
    for i in range(num_layers - 1):
        xw = gcn_aggregate(a_hat_bf16, xw, conv_b[i], conv_w[i + 1],
                           tm=tm, tk=tk, xw_resident=xw_resident,
                           apply_relu=True, vmem_limit=vmem_limit)

    # Last GCNConv: no ReLU (matches reference), emit H (bf16) for pooling.
    h_last = gcn_aggregate(a_hat_bf16, xw, conv_b[num_layers - 1], None,
                           tm=tm, tk=tk, xw_resident=xw_resident,
                           apply_relu=False, vmem_limit=vmem_limit)

    out = pool_and_fc(pool_bf16, h_last, params["fc_w"], params["fc_b"],
                      tm=tm, vmem_limit=vmem_limit)
    return out[:num_graphs, :out_channels]


# ---------------------------------------------------------------------------
# Demo
# ---------------------------------------------------------------------------
if __name__ == "__main__":
    key = jax.random.PRNGKey(0)

    IN_C, HIDDEN, NUM_LAYERS, OUT_C = 8, 32, 3, 4
    N_NODES, N_EDGES, N_GRAPHS = 16, 40, 2

    k_x, k_e, k_p = jax.random.split(key, 3)
    x = jax.random.normal(k_x, (N_NODES, IN_C), jnp.float32)
    edge_index = jax.random.randint(k_e, (2, N_EDGES), 0, N_NODES, jnp.int32)
    # first half of nodes -> graph 0, second half -> graph 1
    batch = jnp.concatenate([jnp.zeros(N_NODES // 2, jnp.int32),
                             jnp.ones(N_NODES - N_NODES // 2, jnp.int32)])

    params = init_params(k_p, IN_C, HIDDEN, NUM_LAYERS, OUT_C)
    # Graph structure built once, outside the forward hot path (bf16).
    a_hat_bf16, pool_bf16 = precompute_graph(edge_index, batch, N_NODES, N_GRAPHS)

    out = simple_gcn_forward(params, x, a_hat_bf16, pool_bf16, N_GRAPHS, OUT_C)
    out = jax.block_until_ready(out)

    assert out.shape == (N_GRAPHS, OUT_C), out.shape
    assert jnp.all(jnp.isfinite(out))
    print("KERNEL_OK")
</pallas_src>

<mosaic_0001>
module attributes {stable_mosaic.version = 11 : i64} {
  func.func @_xw_kernel(%arg0: i32, %arg1: memref<128x128xf32, #tpu.memory_space<vmem>>, %arg2: memref<128x128xf32, #tpu.memory_space<vmem>>, %arg3: memref<128x128xbf16, #tpu.memory_space<vmem>>) attributes {dimension_semantics = [#tpu.dimension_semantics<parallel>], iteration_bounds = array<i64: 1>, scalar_prefetch = 0 : i64, scratch_operands = 0 : i64, tpu.core_type = #tpu.core_type<tc>, window_params = [{transform_indices = @transform_0, window_bounds = array<i64: 128, 128>}, {pipeline_mode = #tpu.pipeline_mode<synchronous>, transform_indices = @transform_1, window_bounds = array<i64: 128, 128>}, {transform_indices = @transform_2, window_bounds = array<i64: 128, 128>}]} {
    %c0 = arith.constant 0 : index
    %c0_0 = arith.constant 0 : index
    %0 = vector.load %arg1[%c0, %c0_0] : memref<128x128xf32, #tpu.memory_space<vmem>>, vector<128x128xf32>
    %c0_1 = arith.constant 0 : index
    %c0_2 = arith.constant 0 : index
    %1 = vector.load %arg2[%c0_1, %c0_2] : memref<128x128xf32, #tpu.memory_space<vmem>>, vector<128x128xf32>
    %cst = arith.constant dense<0.000000e+00> : vector<128x128xf32>
    %2 = tpu.matmul %0, %1, %cst {dimension_numbers = #tpu.dot_dimension_numbers<[1], [0], [0], [1], [0, 0, 1, 1], [], []>} : vector<128x128xf32>, vector<128x128xf32>, vector<128x128xf32> -> vector<128x128xf32>
    %3 = arith.truncf %2 : vector<128x128xf32> to vector<128x128xbf16>
    %c0_3 = arith.constant 0 : index
    %c0_4 = arith.constant 0 : index
    %4 = vector.load %arg3[%c0_3, %c0_4] : memref<128x128xbf16, #tpu.memory_space<vmem>>, vector<128x128xbf16>
    tpu.vector_store %arg3[%c0_3, %c0_4], %3 {strides = array<i32>} : memref<128x128xbf16, #tpu.memory_space<vmem>>, vector<128x128xbf16>,
    return
  }
  func.func @transform_0(%arg0: i32) -> (i32, i32) {
    %c0_i32 = arith.constant 0 : i32
    %c0_i32_0 = arith.constant 0 : i32
    return %arg0, %c0_i32 : i32, i32
  }
  func.func @transform_1(%arg0: i32) -> (i32, i32) {
    %c0_i32 = arith.constant 0 : i32
    %c0_i32_0 = arith.constant 0 : i32
    %c0_i32_1 = arith.constant 0 : i32
    return %c0_i32, %c0_i32_0 : i32, i32
  }
  func.func @transform_2(%arg0: i32) -> (i32, i32) {
    %c0_i32 = arith.constant 0 : i32
    %c0_i32_0 = arith.constant 0 : i32
    return %arg0, %c0_i32 : i32, i32
  }
}

</mosaic_0001>

<bundles_post_ra>
// kernel: tpu_custom_call.1
= control target key start
LH: loop header
LB: loop body
LE: loop exit
PB: predicated region body
PF: predicated region fallthrough
CT: control target
= control target key end

     0   :  { %7 = vsyncpa [#allocation3], 0  ;;  %s667_s0 = inlined_call_operand.hbm [shape: f32[128,128], index: 0, kind: input, shape index: {}]   ;;  %s668_s1 = inlined_call_operand.hbm [shape: f32[128,128], index: 1, kind: input, shape index: {}]   ;;  %s669_s2 = inlined_call_operand.hbm [shape: bf16[128,128], index: 2, kind: output, shape index: {}]  }
   0x1   :  { %8 = vsyncpa [#allocation6], 0 }
   0x2   :  { %9 = vsyncpa [#allocation4], 0  ;;  %s609_s9 = smov [#allocation2]   ;;  %s537_s13 = scalar_lea.hbm %s667_s0, 2048 }
   0x3   :  { %s15_s10 = sshll.u32 %s609_s9, 4  ;;  %p538_p0 = scmp.ne.s32.totalorder %s667_s0, %s537_s13  ;;  %s16_s10 = int_to_ptr.vmem [resolvable:$true] %s15_s10 }
   0x4   :  { %p541_p1 = scmp.lt.u32.totalorder %s537_s13, %s667_s0 }
   0x6   :  { %p543_p2 = pnand %p541_p1, %p538_p0 }
   0x8   :  { %546 = shalt.err (!%p543_p2)
}
   0x9   :  { %s547_s18 = scalar_lea.vmem %s16_s10, 2048  ;;  %p552_p4 = scmp.lt.s32.totalorder %s16_s10, %s16_s10 }
   0xa   :  { %p548_p3 = scmp.ne.s32.totalorder %s16_s10, %s547_s18  ;;  %p553_p5 = scmp.lt.s32.totalorder %s547_s18, %s547_s18 }
   0xc   :  { %p554_p6 = por %p553_p5, %p552_p4 }
   0xe   :  { %p555_p7 = pnand %p554_p6, %p548_p3 }
  0x10   :  { %558 = shalt.err (!%p555_p7)
}
  0x11   :  { %s610_s19 = smov 128   ;;  %s611_s20 = smov 8  }
  0x12   :  { %21 = dma.hbm_to_vmem [thread:$0]  %s667_s0, 2048, %s16_s10, [#allocation3], %s610_s19, %s610_s19, %s611_s20  }
  0x13   :  { %s612_s23 = smov [#allocation5]   ;;  %s559_s27 = scalar_lea.hbm %s668_s1, 2048 }
  0x14   :  { %s27_s24 = sshll.u32 %s612_s23, 4  ;;  %p560_p8 = scmp.ne.s32.totalorder %s668_s1, %s559_s27  ;;  %s28_s24 = int_to_ptr.vmem [resolvable:$true] %s27_s24 }
  0x15   :  { %p563_p9 = scmp.lt.u32.totalorder %s559_s27, %s668_s1 }
  0x17   :  { %p565_p10 = pnand %p563_p9, %p560_p8 }
  0x19   :  { %568 = shalt.err (!%p565_p10)
}
  0x1a   :  { %s569_s4 = scalar_lea.vmem %s28_s24, 2048  ;;  %p574_p12 = scmp.lt.s32.totalorder %s28_s24, %s28_s24 }
  0x1b   :  { %p570_p11 = scmp.ne.s32.totalorder %s28_s24, %s569_s4  ;;  %p575_p13 = scmp.lt.s32.totalorder %s569_s4, %s569_s4 }
  0x1d   :  { %p576_p0 = por %p575_p13, %p574_p12 }
  0x1f   :  { %p577_p1 = pnand %p576_p0, %p570_p11 }
  0x21   :  { %580 = shalt.err (!%p577_p1)
}
  0x22   :  { %33 = dma.hbm_to_vmem [thread:$0]  %s668_s1, 2048, %s28_s24, [#allocation6], %s610_s19, %s610_s19, %s611_s20  }
  0x23   :  { %603 = dma.done.wait [#allocation3], 2048  }
  0x24   :  { %604 = vsyncadd [#allocation3], 4294965248 }
  0x25   :  { %605 = dma.done.wait [#allocation6], 2048  }
  0x26   :  { %606 = vsyncadd [#allocation6], 4294965248  ;;  %v56_v0 = vld [vmem:[#allocation5] sm:$0xff]  ;;  %v57_v1 = vld [vmem:[#allocation5 + $0x8] sm:$0xff]  ;;  %s613_s1 = smov [#allocation7]  }
  0x27   :  { %v58_v2 = vld [vmem:[#allocation5 + $0x10] sm:$0xff]  ;;  %v482_v3 = vpack.c.bf16 %v57_v1, %v56_v0  ;;  %v59_v4 = vld [vmem:[#allocation5 + $0x18] sm:$0xff]  ;;  %v60_v6 = vld [vmem:[#allocation5 + $0x20] sm:$0xff]  ;;  %s302_s6 = sshll.u32 %s613_s1, 4  ;;  %s303_s6 = int_to_ptr.vmem [resolvable:$true] %s302_s6 }
  0x28   :  { %v486_v5 = vpack.c.bf16 %v59_v4, %v58_v2  ;;  %v61_v7 = vld [vmem:[#allocation5 + $0x28] sm:$0xff]  ;;  %v40_v9 = vld [vmem:[#allocation2] sm:$0xff]  ;;  %v62_v11 = vld [vmem:[#allocation5 + $0x30] sm:$0xff]  ;;  %s581_s7 = scalar_lea.vmem %s303_s6, 1024  ;;  %p586_p3 = scmp.lt.s32.totalorder %s303_s6, %s303_s6 }
  0x29   :  { %483 = vmatprep.subr.bf16.mxu0 %v482_v3  ;;  %514 = vmatprep.subr.bf16.mxu1 %v482_v3  ;;  %v490_v8 = vpack.c.bf16 %v61_v7, %v60_v6  ;;  %v48_v10 = vld [vmem:[#allocation2 + $0x40] sm:$0xff]  ;;  %v63_v12 = vld [vmem:[#allocation5 + $0x38] sm:$0xff]  ;;  %v65_v15 = vld [vmem:[#allocation5 + $0x48] sm:$0xff]  ;;  %p582_p2 = scmp.ne.s32.totalorder %s303_s6, %s581_s7  ;;  %p587_p4 = scmp.lt.s32.totalorder %s581_s7, %s581_s7 }
  0x2a   :  { %485 = vmatpush3.bf16.msra.mxu0 %v482_v3  ;;  %522 = vmatpush3.bf16.msra.mxu1 %v482_v3  ;;  %v494_v13 = vpack.c.bf16 %v63_v12, %v62_v11  ;;  %v64_v14 = vld [vmem:[#allocation5 + $0x40] sm:$0xff]  ;;  %v66_v17 = vld [vmem:[#allocation5 + $0x50] sm:$0xff]  ;;  %v67_v18 = vld [vmem:[#allocation5 + $0x58] sm:$0xff] }
  0x2b   :  { %487 = vmatprep.subr.bf16.mxu0 %v486_v5  ;;  %515 = vmatprep.subr.bf16.mxu1 %v486_v5  ;;  %v498_v16 = vpack.c.bf16 %v65_v15, %v64_v14  ;;  %v502_v19 = vpack.c.bf16 %v67_v18, %v66_v17  ;;  %v68_v20 = vld [vmem:[#allocation5 + $0x60] sm:$0xff]  ;;  %v69_v21 = vld [vmem:[#allocation5 + $0x68] sm:$0xff]  ;;  %v70_v23 = vld [vmem:[#allocation5 + $0x70] sm:$0xff]  ;;  %p588_p5 = por %p587_p4, %p586_p3 }
  0x2c   :  { %458 = vmatprep.mubr.f32.mxu0 %v40_v9  ;;  %470 = vmatprep.mubr.f32.mxu1 %v48_v10  ;;  %v506_v22 = vpack.c.bf16 %v69_v21, %v68_v20  ;;  %v71_v24 = vld [vmem:[#allocation5 + $0x78] sm:$0xff]  ;;  %v41_v26 = vld [vmem:[#allocation2 + $0x8] sm:$0xff]  ;;  %v42_v28 = vld [vmem:[#allocation2 + $0x10] sm:$0xff] }
  0x2d   :  { %v510_v25 = vpack.c.bf16 %v71_v24, %v70_v23  ;;  %v49_v27 = vld [vmem:[#allocation2 + $0x48] sm:$0xff]  ;;  %v50_v29 = vld [vmem:[#allocation2 + $0x50] sm:$0xff]  ;;  %v43_v30 = vld [vmem:[#allocation2 + $0x18] sm:$0xff]  ;;  %p589_p6 = pnand %p588_p5, %p582_p2 }
  0x2e   :  { %489 = vmatpush3.bf16.msra.mxu0 %v486_v5  ;;  %523 = vmatpush3.bf16.msra.mxu1 %v486_v5  ;;  %v51_v31 = vld [vmem:[#allocation2 + $0x58] sm:$0xff]  ;;  %v44_v32 = vld [vmem:[#allocation2 + $0x20] sm:$0xff]  ;;  %v45_v34 = vld [vmem:[#allocation2 + $0x28] sm:$0xff] }
  0x2f   :  { %491 = vmatprep.subr.bf16.mxu0 %v490_v8  ;;  %516 = vmatprep.subr.bf16.mxu1 %v490_v8  ;;  %v52_v33 = vld [vmem:[#allocation2 + $0x60] sm:$0xff]  ;;  %v53_v35 = vld [vmem:[#allocation2 + $0x68] sm:$0xff]  ;;  %v46_v36 = vld [vmem:[#allocation2 + $0x30] sm:$0xff] }
  0x30   :  { %v54_v37 = vld [vmem:[#allocation2 + $0x70] sm:$0xff]  ;;  %v47_v38 = vld [vmem:[#allocation2 + $0x38] sm:$0xff] }
  0x31   :  { %v55_v39 = vld [vmem:[#allocation2 + $0x78] sm:$0xff] }
  0x32   :  { %493 = vmatpush3.bf16.msra.mxu0 %v490_v8  ;;  %524 = vmatpush3.bf16.msra.mxu1 %v490_v8 }
  0x33   :  { %495 = vmatprep.subr.bf16.mxu0 %v494_v13  ;;  %517 = vmatprep.subr.bf16.mxu1 %v494_v13 }
  0x36   :  { %497 = vmatpush3.bf16.msra.mxu0 %v494_v13  ;;  %525 = vmatpush3.bf16.msra.mxu1 %v494_v13 }
  0x37   :  { %499 = vmatprep.subr.bf16.mxu0 %v498_v16  ;;  %518 = vmatprep.subr.bf16.mxu1 %v498_v16 }
  0x3a   :  { %501 = vmatpush3.bf16.msra.mxu0 %v498_v16  ;;  %526 = vmatpush3.bf16.msra.mxu1 %v498_v16 }
  0x3b   :  { %503 = vmatprep.subr.bf16.mxu0 %v502_v19  ;;  %519 = vmatprep.subr.bf16.mxu1 %v502_v19 }
  0x3e   :  { %505 = vmatpush3.bf16.msra.mxu0 %v502_v19  ;;  %527 = vmatpush3.bf16.msra.mxu1 %v502_v19 }
  0x3f   :  { %507 = vmatprep.subr.bf16.mxu0 %v506_v22  ;;  %520 = vmatprep.subr.bf16.mxu1 %v506_v22 }
  0x42   :  { %509 = vmatpush3.bf16.msra.mxu0 %v506_v22  ;;  %528 = vmatpush3.bf16.msra.mxu1 %v506_v22 }
  0x43   :  { %511 = vmatprep.subr.bf16.mxu0 %v510_v25  ;;  %521 = vmatprep.subr.bf16.mxu1 %v510_v25 }
  0x46   :  { %513 = vmatpush3.bf16.msra.mxu0 %v510_v25  ;;  %529 = vmatpush3.bf16.msra.mxu1 %v510_v25 }
  0x49   :  { %459 = vmatmul.mubr.f32.vlgmr.msra.gmra.mrb[0].mxu0 %v41_v26  ;;  %471 = vmatmul.mubr.f32.vlgmr.msra.gmra.mrb[0].mxu1 %v49_v27 }
  0x4a   :  { %461 = vmatprep.mubr.f32.mxu0 %v42_v28  ;;  %473 = vmatprep.mubr.f32.mxu1 %v50_v29 }
  0x4d   :  { %462 = vmatmul.mubr.f32.gmra.mrb[2].mxu0 %v43_v30  ;;  %474 = vmatmul.mubr.f32.gmra.mrb[2].mxu1 %v51_v31 }
  0x4e   :  { %464 = vmatprep.mubr.f32.mxu0 %v44_v32  ;;  %476 = vmatprep.mubr.f32.mxu1 %v52_v33 }
  0x51   :  { %465 = vmatmul.mubr.f32.gmra.mrb[4].mxu0 %v45_v34  ;;  %477 = vmatmul.mubr.f32.gmra.mrb[4].mxu1 %v53_v35 }
  0x52   :  { %467 = vmatprep.mubr.f32.mxu0 %v46_v36  ;;  %479 = vmatprep.mubr.f32.mxu1 %v54_v37 }
  0x55   :  { %468 = vmatmul.mubr.f32.gmra.mrb[6].mxu0 %v47_v38  ;;  %480 = vmatmul.mubr.f32.gmra.mrb[6].mxu1 %v55_v39 }
 0x11c   :  { %v460_v40 = vpop.f32.mrb[0].mxu0  ;;  %v472_v41 = vpop.f32.mrb[0].mxu1 }
 0x11d   :  { %v138_v42 = vpop.f32.mrb[1].mxu0  ;;  %v178_v43 = vpop.f32.mrb[1].mxu1 }
 0x11e   :  { %v350_v44 = vpack.c.bf16 %v460_v40, %v138_v42  ;;  %v370_v45 = vpack.c.bf16 %v472_v41, %v178_v43 }
 0x120   :  { %351 = vst [vmem:[#allocation7] sm:$0xff] %v350_v44   ;;  %390 = vst [vmem:[#allocation7 + $0x20] sm:$0xff] %v370_v45   ;;  %v463_v46 = vpop.f32.mrb[2].mxu0  ;;  %v475_v47 = vpop.f32.mrb[2].mxu1 }
 0x121   :  { %v148_v48 = vpop.f32.mrb[3].mxu0  ;;  %v188_v49 = vpop.f32.mrb[3].mxu1 }
 0x122   :  { %v355_v50 = vpack.c.bf16 %v463_v46, %v148_v48  ;;  %v375_v51 = vpack.c.bf16 %v475_v47, %v188_v49 }
 0x124   :  { %387 = vst [vmem:[#allocation7 + $0x8] sm:$0xff] %v355_v50   ;;  %391 = vst [vmem:[#allocation7 + $0x28] sm:$0xff] %v375_v51   ;;  %v466_v52 = vpop.f32.mrb[4].mxu0  ;;  %v478_v53 = vpop.f32.mrb[4].mxu1 }
 0x125   :  { %v158_v54 = vpop.f32.mrb[5].mxu0  ;;  %v198_v55 = vpop.f32.mrb[5].mxu1 }
 0x126   :  { %v360_v56 = vpack.c.bf16 %v466_v52, %v158_v54  ;;  %v380_v57 = vpack.c.bf16 %v478_v53, %v198_v55 }
 0x128   :  { %388 = vst [vmem:[#allocation7 + $0x10] sm:$0xff] %v360_v56   ;;  %392 = vst [vmem:[#allocation7 + $0x30] sm:$0xff] %v380_v57   ;;  %v469_v58 = vpop.f32.mrb[6].mxu0  ;;  %v481_v59 = vpop.f32.mrb[6].mxu1 }
 0x129   :  { %v168_v60 = vpop.f32.mrb[7].mxu0  ;;  %v208_v61 = vpop.f32.mrb[7].mxu1 }
 0x12a   :  { %v365_v62 = vpack.c.bf16 %v469_v58, %v168_v60  ;;  %v385_v63 = vpack.c.bf16 %v481_v59, %v208_v61 }
 0x12c   :  { %389 = vst [vmem:[#allocation7 + $0x18] sm:$0xff] %v365_v62   ;;  %393 = vst [vmem:[#allocation7 + $0x38] sm:$0xff] %v385_v63  }
 0x12d   :  { %592 = shalt.err (!%p589_p6)
}
 0x12e   :  { %s593_s10 = scalar_lea.hbm %s669_s2, 1024 }
 0x12f   :  { %p594_p7 = scmp.ne.s32.totalorder %s669_s2, %s593_s10  ;;  %p597_p8 = scmp.lt.u32.totalorder %s593_s10, %s669_s2 }
 0x131   :  { %p599_p9 = pnand %p597_p8, %p594_p7 }
 0x133   :  { %602 = shalt.err (!%p599_p9)
}
 0x134   :  { %s614_s15 = smov 64   ;;  %s615_s16 = smov 4  }
 0x135   :  { %308 = dma.vmem_to_hbm [thread:$0]  %s303_s6, 1024, %s669_s2, [#allocation4], %s614_s15, %s614_s15, %s615_s16  }
 0x136   :  { %607 = dma.done.wait [#allocation4], 1024  }
 0x137   :  { %608 = vsyncadd [#allocation4], 4294966272 }
 0x138   :  { %312 = vsyncpa [#allocation3], 1 }
 0x139   :  { %313 = vsyncpa [#allocation6], 1 }
 0x13a   :  { %314 = vsyncpa [#allocation4], 1 }

</bundles_post_ra>
